<compile_context>
chip_gen: v5e
topology: v5e:2x2
jax: 0.10.0
libtpu: 0.0.40
codegen_flags: <defaults>
</compile_context>

<pallas_src>
import numpy as np
import jax
import jax.numpy as jnp
from jax.experimental import pallas as pl
from jax.experimental.pallas import tpu as pltpu


def _round_up(x, m):
    return (x + m - 1) // m * m


def _make_kernel(B, Dk, Do, w_first, single_k):
    """Builds the fused GraphConv kernel body.

    Per-grid-step refs:
      adj_ref: (tm, tk)            adjacency tile
      x_ref:   (tk, B*Dk)          node-major features, batches folded into lanes
      w_ref:   (Dk, Do)            Linear weight (already transposed/padded)
      b_ref:   (1, Do)             bias (f32)
      o_ref:   (tm, B*Do)          output tile
      acc_ref: (tm, B*Dk or B*Do)  f32 accumulator scratch (only when k-tiled)

    B is assumed small (graph batch); the per-batch loop is a static unroll.
    """

    if single_k:
        # Whole contraction fits in one block: no accumulator scratch needed.
        def kernel(adj_ref, x_ref, w_ref, b_ref, o_ref):
            adj = adj_ref[...]
            x = x_ref[...]
            w = w_ref[...]
            bias = b_ref[...]
            if w_first:
                # (x @ W) first: the N^2 matmul runs at width Do < Dk.
                for b in range(B):
                    xw = jnp.dot(x[:, b * Dk:(b + 1) * Dk], w,
                                 preferred_element_type=jnp.float32)
                    h = jnp.dot(adj, xw.astype(adj.dtype),
                                preferred_element_type=jnp.float32)
                    o_ref[:, b * Do:(b + 1) * Do] = jnp.maximum(
                        h + bias, 0.0).astype(o_ref.dtype)
            else:
                # Message passing for all batches in one lane-dense matmul.
                h = jnp.dot(adj, x, preferred_element_type=jnp.float32)
                for b in range(B):
                    yb = jnp.dot(h[:, b * Dk:(b + 1) * Dk].astype(w.dtype), w,
                                 preferred_element_type=jnp.float32)
                    o_ref[:, b * Do:(b + 1) * Do] = jnp.maximum(
                        yb + bias, 0.0).astype(o_ref.dtype)
        return kernel

    def kernel(adj_ref, x_ref, w_ref, b_ref, o_ref, acc_ref):
        k = pl.program_id(1)
        nk = pl.num_programs(1)

        @pl.when(k == 0)
        def _init():
            acc_ref[...] = jnp.zeros_like(acc_ref)

        adj = adj_ref[...]
        x = x_ref[...]
        w = w_ref[...]

        if w_first:
            for b in range(B):
                xw = jnp.dot(x[:, b * Dk:(b + 1) * Dk], w,
                             preferred_element_type=jnp.float32)
                acc_ref[:, b * Do:(b + 1) * Do] += jnp.dot(
                    adj, xw.astype(adj.dtype), preferred_element_type=jnp.float32)
        else:
            acc_ref[...] += jnp.dot(adj, x, preferred_element_type=jnp.float32)

        @pl.when(k == nk - 1)
        def _finalize():
            bias = b_ref[...]
            if w_first:
                for b in range(B):
                    o_ref[:, b * Do:(b + 1) * Do] = jnp.maximum(
                        acc_ref[:, b * Do:(b + 1) * Do] + bias, 0.0
                    ).astype(o_ref.dtype)
            else:
                h = acc_ref[...]
                for b in range(B):
                    yb = jnp.dot(h[:, b * Dk:(b + 1) * Dk].astype(w.dtype), w,
                                 preferred_element_type=jnp.float32)
                    o_ref[:, b * Do:(b + 1) * Do] = jnp.maximum(
                        yb + bias, 0.0).astype(o_ref.dtype)

    return kernel


def prepare_graph_conv_params(weight, bias, *, mxu_dtype=None):
    """Hoist Linear-weight transpose + lane padding out of the per-call path.

    weight: (Dout, Din) in PyTorch nn.Linear layout; bias: (Dout,).
    Returns (w_t, bias2, out_dim): w_t (Din_pad, Dout_pad), bias2 (1, Dout_pad) f32.
    """
    Dout, Din = weight.shape
    Dk = _round_up(Din, 128)
    Do = _round_up(Dout, 128)
    w_t = jnp.pad(weight, ((0, Do - Dout), (0, Dk - Din))).T          # (Dk, Do)
    if mxu_dtype is not None:
        w_t = w_t.astype(mxu_dtype)
    b2 = jnp.pad(bias.astype(jnp.float32), (0, Do - Dout)).reshape(1, Do)
    return w_t, b2, Dout


def graph_conv(x, adj, w_t, b2, out_dim, *, mxu_dtype=None, tile=256):
    """Fused GraphConv forward: dropout(relu(adj @ x @ W^T + b)) (eval dropout).

    x: (B, N, in_dim), adj: (N, N); w_t / b2 from prepare_graph_conv_params.
    """
    B, N, Din = x.shape
    Dk, Do = w_t.shape
    assert Dk == _round_up(Din, 128), "w_t does not match x's feature dim"
    out_dtype = x.dtype

    # --- padding / tiling ----------------------------------------------------
    row_align = 16 if mxu_dtype == jnp.bfloat16 else 8
    if N <= tile:
        Np = _round_up(N, row_align)
        tm = tk = Np                      # single block, single grid step per row axis
    else:
        Np = _round_up(N, tile)
        tm = tk = tile
    n_i = Np // tm
    n_k = Np // tk
    single_k = n_k == 1

    # Matmul reorder: do x@W first when it shrinks the N^2 matmul and the
    # per-row-tile recompute of x@W does not eat the savings.
    if Do < Dk:
        w_first = single_k or (tm * (Dk - Do) > Dk * Do)
    else:
        w_first = False

    # --- layout plumbing: pad, fold batch into lanes (node-major) ------------
    x_p = jnp.pad(x, ((0, 0), (0, Np - N), (0, Dk - Din)))            # (B, Np, Dk)
    x2 = jnp.transpose(x_p, (1, 0, 2)).reshape(Np, B * Dk)            # (Np, B*Dk)
    adj_p = jnp.pad(adj, ((0, Np - N), (0, Np - N)))                  # (Np, Np)
    if mxu_dtype is not None:
        x2 = x2.astype(mxu_dtype)
        adj_p = adj_p.astype(mxu_dtype)

    kernel = _make_kernel(B, Dk, Do, w_first, single_k)
    acc_w = B * (Do if w_first else Dk)
    scratch = [] if single_k else [pltpu.VMEM((tm, acc_w), jnp.float32)]

    # --- VMEM budget: only override the default scoped limit when needed -----
    in_isz = np.dtype(mxu_dtype).itemsize if mxu_dtype is not None else np.dtype(x.dtype).itemsize
    out_isz = np.dtype(out_dtype).itemsize
    est = (2 * (tm * tk + tk * B * Dk) * in_isz        # double-buffered adj & x tiles
           + 2 * tm * B * Do * out_isz                 # double-buffered out tile
           + (0 if single_k else tm * acc_w * 4)       # resident f32 accumulator
           + Dk * Do * in_isz + Do * 4)                # resident W^T + bias
    vmem_limit = None
    if est > 16 * 1024 * 1024:                         # smallest default scoped VMEM (v5e)
        vmem_limit = min(int(est * 1.25), 64 * 1024 * 1024)   # cap at v7x physical VMEM/TC

    # --- advisory cost estimate for the XLA scheduler -------------------------
    if w_first:
        flops = 2 * B * (n_i * Np * Dk * Do + Np * Np * Do)
    else:
        flops = 2 * B * (Np * Np * Dk + Np * Dk * Do)
    bytes_accessed = (Np * Np * in_isz + Np * B * Dk * in_isz
                      + Np * B * Do * out_isz + Dk * Do * in_isz + Do * 4)
    cost = pl.CostEstimate(flops=flops, transcendentals=0,
                           bytes_accessed=bytes_accessed)

    out2 = pl.pallas_call(
        kernel,
        out_shape=jax.ShapeDtypeStruct((Np, B * Do), out_dtype),
        grid_spec=pltpu.PrefetchScalarGridSpec(
            num_scalar_prefetch=0,
            grid=(n_i, n_k),                                        # reduction axis last
            in_specs=[
                pl.BlockSpec((tm, tk), lambda i, k: (i, k)),        # adj tile
                pl.BlockSpec((tk, B * Dk), lambda i, k: (k, 0)),    # x (batch folded into lanes)
                pl.BlockSpec((Dk, Do), lambda i, k: (0, 0)),        # W^T (resident)
                pl.BlockSpec((1, Do), lambda i, k: (0, 0)),         # bias (resident)
            ],
            out_specs=pl.BlockSpec((tm, B * Do), lambda i, k: (i, 0)),
            scratch_shapes=scratch,
        ),
        compiler_params=pltpu.CompilerParams(
            dimension_semantics=("parallel", "arbitrary"),
            vmem_limit_bytes=vmem_limit,
        ),
        cost_estimate=cost,
    )(adj_p, x2, w_t, b2)

    # unfold batch, drop padding
    out = jnp.transpose(out2.reshape(Np, B, Do), (1, 0, 2))[:, :N, :out_dim]
    return out


def graph_conv_ref(x, adj, weight, bias):
    h = jnp.einsum("nm,bmd->bnd", adj, x)
    y = jnp.einsum("bnd,od->bno", h, weight) + bias
    return jnp.maximum(y, 0.0)


if __name__ == "__main__":
    key = jax.random.PRNGKey(0)

    def make_inputs(k, B, N, Din, Dout):
        k_x, k_adj, k_w, k_b = jax.random.split(k, 4)
        x = jax.random.normal(k_x, (B, N, Din), dtype=jnp.float32)
        adj = jax.random.uniform(k_adj, (N, N), dtype=jnp.float32)
        bound = 1.0 / (Din ** 0.5)
        weight = jax.random.uniform(k_w, (Dout, Din), minval=-bound, maxval=bound,
                                    dtype=jnp.float32)
        bias = jax.random.uniform(k_b, (Dout,), minval=-bound, maxval=bound,
                                  dtype=jnp.float32)
        return x, adj, weight, bias

    cases = [
        # (B, N, Din, Dout, mxu_dtype,      tile, atol, rtol)
        (2, 16, 32, 32, None, 256, 1e-3, 1e-3),            # small: single block, adj-first
        (2, 16, 256, 32, None, 256, 1e-3, 1e-3),           # Din > Dout: reordered (x@W first)
        (1, 384, 64, 64, jnp.bfloat16, 128, 5e-1, 5e-2),   # tiled grid + f32 acc + bf16 MXU
    ]
    keys = jax.random.split(key, len(cases))
    for cfg_key, (B, N, Din, Dout, mxu, tile, atol, rtol) in zip(keys, cases):
        x, adj, weight, bias = make_inputs(cfg_key, B, N, Din, Dout)
        w_t, b2, od = prepare_graph_conv_params(weight, bias, mxu_dtype=mxu)
        out = graph_conv(x, adj, w_t, b2, od, mxu_dtype=mxu, tile=tile)
        out = jax.block_until_ready(out)
        ref = graph_conv_ref(x, adj, weight, bias)
        assert out.shape == (B, N, Dout)
        assert jnp.allclose(out, ref, atol=atol, rtol=rtol), (
            f"mismatch vs reference: B={B} N={N} Din={Din} Dout={Dout} mxu={mxu}")

    print("KERNEL_OK")
</pallas_src>

<mosaic_0001>
module attributes {stable_mosaic.version = 11 : i64} {
  func.func @kernel(%arg0: i32, %arg1: i32, %arg2: memref<16x16xf32, #tpu.memory_space<vmem>>, %arg3: memref<16x256xf32, #tpu.memory_space<vmem>>, %arg4: memref<128x128xf32, #tpu.memory_space<vmem>>, %arg5: memref<1x128xf32, #tpu.memory_space<vmem>>, %arg6: memref<16x256xf32, #tpu.memory_space<vmem>>) attributes {dimension_semantics = [#tpu.dimension_semantics<parallel>, #tpu.dimension_semantics<arbitrary>], iteration_bounds = array<i64: 1, 1>, scalar_prefetch = 0 : i64, scratch_operands = 0 : i64, tpu.core_type = #tpu.core_type<tc>, window_params = [{transform_indices = @transform_0, window_bounds = array<i64: 16, 16>}, {transform_indices = @transform_1, window_bounds = array<i64: 16, 256>}, {pipeline_mode = #tpu.pipeline_mode<synchronous>, transform_indices = @transform_2, window_bounds = array<i64: 128, 128>}, {pipeline_mode = #tpu.pipeline_mode<synchronous>, transform_indices = @transform_3, window_bounds = array<i64: 1, 128>}, {transform_indices = @transform_4, window_bounds = array<i64: 16, 256>}]} {
    %c0 = arith.constant 0 : index
    %c0_0 = arith.constant 0 : index
    %0 = vector.load %arg2[%c0, %c0_0] : memref<16x16xf32, #tpu.memory_space<vmem>>, vector<16x16xf32>
    %c0_1 = arith.constant 0 : index
    %c0_2 = arith.constant 0 : index
    %1 = vector.load %arg3[%c0_1, %c0_2] : memref<16x256xf32, #tpu.memory_space<vmem>>, vector<16x256xf32>
    %c0_3 = arith.constant 0 : index
    %c0_4 = arith.constant 0 : index
    %2 = vector.load %arg4[%c0_3, %c0_4] : memref<128x128xf32, #tpu.memory_space<vmem>>, vector<128x128xf32>
    %c0_5 = arith.constant 0 : index
    %c0_6 = arith.constant 0 : index
    %3 = vector.load %arg5[%c0_5, %c0_6] : memref<1x128xf32, #tpu.memory_space<vmem>>, vector<1x128xf32>
    %cst = arith.constant dense<0.000000e+00> : vector<16x256xf32>
    %4 = tpu.matmul %0, %1, %cst {dimension_numbers = #tpu.dot_dimension_numbers<[1], [0], [0], [1], [0, 0, 1, 1], [], []>} : vector<16x16xf32>, vector<16x256xf32>, vector<16x256xf32> -> vector<16x256xf32>
    %5 = vector.extract_strided_slice %4 {offsets = [0, 0], sizes = [16, 128], strides = [1, 1]} : vector<16x256xf32> to vector<16x128xf32>
    %cst_7 = arith.constant dense<0.000000e+00> : vector<16x128xf32>
    %6 = tpu.matmul %5, %2, %cst_7 {dimension_numbers = #tpu.dot_dimension_numbers<[1], [0], [0], [1], [0, 0, 1, 1], [], []>} : vector<16x128xf32>, vector<128x128xf32>, vector<16x128xf32> -> vector<16x128xf32>
    %7 = vector.broadcast %3 : vector<1x128xf32> to vector<16x128xf32>
    %8 = arith.addf %6, %7 : vector<16x128xf32>
    %cst_8 = arith.constant 0.000000e+00 : f32
    %9 = vector.broadcast %cst_8 : f32 to vector<16x128xf32>
    %10 = arith.maximumf %8, %9 : vector<16x128xf32>
    %c0_9 = arith.constant 0 : index
    %c0_10 = arith.constant 0 : index
    %11 = vector.load %arg6[%c0_9, %c0_10] : memref<16x256xf32, #tpu.memory_space<vmem>>, vector<16x128xf32>
    tpu.vector_store %arg6[%c0_9, %c0_10], %10 {strides = array<i32>} : memref<16x256xf32, #tpu.memory_space<vmem>>, vector<16x128xf32>,
    %12 = vector.extract_strided_slice %4 {offsets = [0, 128], sizes = [16, 128], strides = [1, 1]} : vector<16x256xf32> to vector<16x128xf32>
    %cst_11 = arith.constant dense<0.000000e+00> : vector<16x128xf32>
    %13 = tpu.matmul %12, %2, %cst_11 {dimension_numbers = #tpu.dot_dimension_numbers<[1], [0], [0], [1], [0, 0, 1, 1], [], []>} : vector<16x128xf32>, vector<128x128xf32>, vector<16x128xf32> -> vector<16x128xf32>
    %14 = vector.broadcast %3 : vector<1x128xf32> to vector<16x128xf32>
    %15 = arith.addf %13, %14 : vector<16x128xf32>
    %cst_12 = arith.constant 0.000000e+00 : f32
    %16 = vector.broadcast %cst_12 : f32 to vector<16x128xf32>
    %17 = arith.maximumf %15, %16 : vector<16x128xf32>
    %c0_13 = arith.constant 0 : index
    %c128 = arith.constant 128 : index
    %18 = vector.load %arg6[%c0_13, %c128] : memref<16x256xf32, #tpu.memory_space<vmem>>, vector<16x128xf32>
    tpu.vector_store %arg6[%c0_13, %c128], %17 {strides = array<i32>} : memref<16x256xf32, #tpu.memory_space<vmem>>, vector<16x128xf32>,
    return
  }
  func.func @transform_0(%arg0: i32, %arg1: i32) -> (i32, i32) {
    %c0_i32 = arith.constant 0 : i32
    return %arg0, %arg1 : i32, i32
  }
  func.func @transform_1(%arg0: i32, %arg1: i32) -> (i32, i32) {
    %c0_i32 = arith.constant 0 : i32
    %c0_i32_0 = arith.constant 0 : i32
    return %arg1, %c0_i32 : i32, i32
  }
  func.func @transform_2(%arg0: i32, %arg1: i32) -> (i32, i32) {
    %c0_i32 = arith.constant 0 : i32
    %c0_i32_0 = arith.constant 0 : i32
    %c0_i32_1 = arith.constant 0 : i32
    return %c0_i32, %c0_i32_0 : i32, i32
  }
  func.func @transform_3(%arg0: i32, %arg1: i32) -> (i32, i32) {
    %c0_i32 = arith.constant 0 : i32
    %c0_i32_0 = arith.constant 0 : i32
    %c0_i32_1 = arith.constant 0 : i32
    return %c0_i32, %c0_i32_0 : i32, i32
  }
  func.func @transform_4(%arg0: i32, %arg1: i32) -> (i32, i32) {
    %c0_i32 = arith.constant 0 : i32
    %c0_i32_0 = arith.constant 0 : i32
    return %arg0, %c0_i32 : i32, i32
  }
}

</mosaic_0001>

<bundles_post_ra>
// kernel: tpu_custom_call.1
= control target key start
LH: loop header
LB: loop body
LE: loop exit
PB: predicated region body
PF: predicated region fallthrough
CT: control target
= control target key end

     0   :  { %9 = vsyncpa [#allocation3], 0  ;;  %s423_s0 = inlined_call_operand.hbm [shape: f32[16,16], index: 0, kind: input, shape index: {}]   ;;  %s424_s1 = inlined_call_operand.hbm [shape: f32[16,256], index: 1, kind: input, shape index: {}]   ;;  %s425_s2 = inlined_call_operand.hbm [shape: f32[128,128], index: 2, kind: input, shape index: {}]   ;;  %s426_s3 = inlined_call_operand.vmem [shape: f32[1,128], index: 3, kind: input, shape index: {}]   ;;  %s427_s4 = inlined_call_operand.hbm [shape: f32[16,256], index: 4, kind: output, shape index: {}]  }
   0x1   :  { %10 = vsyncpa [#allocation6], 0  ;;  %s29_s17 = sshll.u32 %s424_s1, 4  ;;  %s30_s17 = int_to_ptr.hbm [resolvable:$true] %s29_s17 }
   0x2   :  { %11 = vsyncpa [#allocation4], 0  ;;  %s365_s18 = smov [#allocation5]   ;;  %s16_s22 = sshll.u32 %s423_s0, 4  ;;  %s17_s22 = int_to_ptr.hbm [resolvable:$true] %s16_s22 }
   0x3   :  { %s31_s19 = sshll.u32 %s365_s18, 4  ;;  %s366_s23 = smov 256   ;;  %s32_s19 = int_to_ptr.vmem [resolvable:$true] %s31_s19 }
   0x4   :  { %s367_s24 = smov 16   ;;  %s368_s25 = smov [#allocation2]  }
   0x5   :  { %37 = dma.hbm_to_vmem [thread:$0]  %s30_s17, 512, %s32_s19, [#allocation6], %s366_s23, %s366_s23, %s367_s24  }
   0x6   :  { %s18_s26 = sshll.u32 %s368_s25, 4  ;;  %s369_s1 = smov 128   ;;  %s19_s26 = int_to_ptr.vmem [resolvable:$true] %s18_s26 }
   0x7   :  { %s370_s27 = smov 8   ;;  %s42_s30 = sshll.u32 %s425_s2, 4  ;;  %s43_s30 = int_to_ptr.hbm [resolvable:$true] %s42_s30 }
   0x8   :  { %24 = dma.hbm_to_vmem [thread:$0]  %s17_s22, 256, %s19_s26, [#allocation3], %s369_s1, %s369_s1, %s370_s27  }
   0x9   :  { %s371_s5 = smov [#allocation7]  }
   0xa   :  { %s44_s0 = sshll.u32 %s371_s5, 4  ;;  %s45_s0 = int_to_ptr.vmem [resolvable:$true] %s44_s0 }
   0xb   :  { %50 = dma.hbm_to_vmem [thread:$0]  %s43_s30, 2048, %s45_s0, [#allocation6], %s369_s1, %s369_s1, %s370_s27  }
   0xc   :  { %359 = dma.done.wait [#allocation3], 256  }
   0xd   :  { %360 = vsyncadd [#allocation3], 4294967040 }
   0xe   :  { %361 = dma.done.wait [#allocation6], 2560  }
   0xf   :  { %362 = vsyncadd [#allocation6], 4294964736  ;;  %v69_v0 = vld [vmem:[#allocation5 + $0x10] sm:$0xff]  ;;  %v70_v1 = vld [vmem:[#allocation5 + $0x18] sm:$0xff]  ;;  %vm88_vm0 = vcmask 130048   ;;  %s372_s7 = smov [#allocation8]  }
  0x10   :  { %v67_v2 = vld [vmem:[#allocation5] sm:$0xff]  ;;  %109 = vmatpush.msra.mxu0 %v69_v0  ;;  %132 = vmatpush.msra.mxu1 %v70_v1  ;;  %v68_v3 = vld [vmem:[#allocation5 + $0x8] sm:$0xff]  ;;  %v65_v4 = vld [vmem:[#allocation2] sm:$0xff]  ;;  %s202_s8 = sshll.u32 %s372_s7, 4  ;;  %s204_s11 = sshll.u32 %s427_s4, 4  ;;  %s203_s8 = int_to_ptr.vmem [resolvable:$true] %s202_s8  ;;  %s205_s11 = int_to_ptr.hbm [resolvable:$true] %s204_s11 }
  0x11   :  { %v86_v5 = vld [vmem:[#allocation7 + $0x78] sm:$0xff]  ;;  %v85_v6 = vld [vmem:[#allocation7 + $0x70] sm:$0xff]  ;;  %v84_v7 = vld [vmem:[#allocation7 + $0x68] sm:$0xff] }
  0x12   :  { %110 = vmatpush.msra.mxu0 %v67_v2  ;;  %133 = vmatpush.msra.mxu1 %v68_v3  ;;  %v83_v8 = vld [vmem:[#allocation7 + $0x60] sm:$0xff]  ;;  %v66_v9 = vld [vmem:[#allocation2 + $0x8] sm:$0xff]  ;;  %v81_v11 = vld [vmem:[#allocation7 + $0x50] sm:$0xff] }
  0x13   :  { %218 = vmatmul.msk.f32.vlgmr.msra.gmra.mxu0 %vm88_vm0, %v65_v4  ;;  %220 = vmatmul.msk.f32.vlgmr.msra.gmra.mxu1 %vm88_vm0, %v65_v4  ;;  %v82_v10 = vld [vmem:[#allocation7 + $0x58] sm:$0xff]  ;;  %v80_v12 = vld [vmem:[#allocation7 + $0x48] sm:$0xff]  ;;  %v79_v13 = vld [vmem:[#allocation7 + $0x40] sm:$0xff] }
  0x14   :  { %144 = vmatpush.msrb.mxu0 %v86_v5  ;;  %171 = vmatpush.msrb.mxu1 %v86_v5  ;;  %v78_v14 = vld [vmem:[#allocation7 + $0x38] sm:$0xff]  ;;  %v77_v15 = vld [vmem:[#allocation7 + $0x30] sm:$0xff]  ;;  %v76_v16 = vld [vmem:[#allocation7 + $0x28] sm:$0xff] }
  0x15   :  { %222 = vmatpush.msra.mxu2 %v86_v5  ;;  %238 = vmatpush.msra.mxu3 %v86_v5  ;;  %v75_v17 = vld [vmem:[#allocation7 + $0x20] sm:$0xff]  ;;  %v74_v18 = vld [vmem:[#allocation7 + $0x18] sm:$0xff]  ;;  %v73_v19 = vld [vmem:[#allocation7 + $0x10] sm:$0xff] }
  0x16   :  { %145 = vmatpush.msrb.mxu0 %v85_v6  ;;  %172 = vmatpush.msrb.mxu1 %v85_v6  ;;  %v72_v20 = vld [vmem:[#allocation7 + $0x8] sm:$0xff]  ;;  %v71_v21 = vld [vmem:[#allocation7] sm:$0xff]  ;;  %v262_v26 = vld [vmem:[%s426_s3] ss:$0 sm:$0xff] }
  0x17   :  { %223 = vmatpush.msra.mxu2 %v85_v6  ;;  %239 = vmatpush.msra.mxu3 %v85_v6 }
  0x18   :  { %146 = vmatpush.msrb.mxu0 %v84_v7  ;;  %173 = vmatpush.msrb.mxu1 %v84_v7 }
  0x19   :  { %224 = vmatpush.msra.mxu2 %v84_v7  ;;  %240 = vmatpush.msra.mxu3 %v84_v7 }
  0x1a   :  { %147 = vmatpush.msrb.mxu0 %v83_v8  ;;  %174 = vmatpush.msrb.mxu1 %v83_v8 }
  0x1b   :  { %219 = vmatmul.msk.f32.gmra.mxu0 %vm88_vm0, %v66_v9  ;;  %221 = vmatmul.msk.f32.gmra.mxu1 %vm88_vm0, %v66_v9 }
  0x1c   :  { %148 = vmatpush.msrb.mxu0 %v82_v10  ;;  %175 = vmatpush.msrb.mxu1 %v82_v10 }
  0x1d   :  { %225 = vmatpush.msra.mxu2 %v83_v8  ;;  %241 = vmatpush.msra.mxu3 %v83_v8 }
  0x1e   :  { %149 = vmatpush.msrb.mxu0 %v81_v11  ;;  %176 = vmatpush.msrb.mxu1 %v81_v11 }
  0x1f   :  { %226 = vmatpush.msra.mxu2 %v82_v10  ;;  %242 = vmatpush.msra.mxu3 %v82_v10 }
  0x20   :  { %150 = vmatpush.msrb.mxu0 %v80_v12  ;;  %177 = vmatpush.msrb.mxu1 %v80_v12 }
  0x21   :  { %227 = vmatpush.msra.mxu2 %v81_v11  ;;  %243 = vmatpush.msra.mxu3 %v81_v11 }
  0x22   :  { %151 = vmatpush.msrb.mxu0 %v79_v13  ;;  %178 = vmatpush.msrb.mxu1 %v79_v13 }
  0x23   :  { %228 = vmatpush.msra.mxu2 %v80_v12  ;;  %244 = vmatpush.msra.mxu3 %v80_v12 }
  0x24   :  { %152 = vmatpush.msrb.mxu0 %v78_v14  ;;  %179 = vmatpush.msrb.mxu1 %v78_v14 }
  0x25   :  { %229 = vmatpush.msra.mxu2 %v79_v13  ;;  %245 = vmatpush.msra.mxu3 %v79_v13 }
  0x26   :  { %153 = vmatpush.msrb.mxu0 %v77_v15  ;;  %180 = vmatpush.msrb.mxu1 %v77_v15 }
  0x27   :  { %230 = vmatpush.msra.mxu2 %v78_v14  ;;  %246 = vmatpush.msra.mxu3 %v78_v14 }
  0x28   :  { %154 = vmatpush.msrb.mxu0 %v76_v16  ;;  %181 = vmatpush.msrb.mxu1 %v76_v16 }
  0x29   :  { %231 = vmatpush.msra.mxu2 %v77_v15  ;;  %247 = vmatpush.msra.mxu3 %v77_v15 }
  0x2a   :  { %155 = vmatpush.msrb.mxu0 %v75_v17  ;;  %182 = vmatpush.msrb.mxu1 %v75_v17 }
  0x2b   :  { %232 = vmatpush.msra.mxu2 %v76_v16  ;;  %248 = vmatpush.msra.mxu3 %v76_v16 }
  0x2c   :  { %156 = vmatpush.msrb.mxu0 %v74_v18  ;;  %183 = vmatpush.msrb.mxu1 %v74_v18 }
  0x2d   :  { %233 = vmatpush.msra.mxu2 %v75_v17  ;;  %249 = vmatpush.msra.mxu3 %v75_v17 }
  0x2e   :  { %157 = vmatpush.msrb.mxu0 %v73_v19  ;;  %184 = vmatpush.msrb.mxu1 %v73_v19 }
  0x2f   :  { %234 = vmatpush.msra.mxu2 %v74_v18  ;;  %250 = vmatpush.msra.mxu3 %v74_v18 }
  0x30   :  { %158 = vmatpush.msrb.mxu0 %v72_v20  ;;  %185 = vmatpush.msrb.mxu1 %v72_v20 }
  0x31   :  { %235 = vmatpush.msra.mxu2 %v73_v19  ;;  %251 = vmatpush.msra.mxu3 %v73_v19 }
  0x32   :  { %159 = vmatpush.msrb.mxu0 %v71_v21  ;;  %186 = vmatpush.msrb.mxu1 %v71_v21 }
  0x33   :  { %236 = vmatpush.msra.mxu2 %v72_v20  ;;  %252 = vmatpush.msra.mxu3 %v72_v20 }
  0x35   :  { %237 = vmatpush.msra.mxu2 %v71_v21  ;;  %253 = vmatpush.msra.mxu3 %v71_v21 }
  0x90   :  { %v112_v22 = vpop.f32.mrf.mxu0  ;;  %v135_v23 = vpop.f32.mrf.mxu1 }
  0x91   :  { %160 = vmatmul.f32.vlgmr.msrb.gmra.mxu0 %v112_v22  ;;  %187 = vmatmul.f32.vlgmr.msrb.gmra.mxu1 %v135_v23 }
  0x98   :  { %v115_v24 = vpop.f32.mrf.mxu0  ;;  %v138_v25 = vpop.f32.mrf.mxu1 }
  0x99   :  { %163 = vmatmul.f32.vlgmr.msra.gmra.mxu2 %v115_v24  ;;  %190 = vmatmul.f32.vlgmr.msra.gmra.mxu3 %v138_v25 }
 0x10e   :  { %v161_v27 = vpop.f32.mrf.mxu0  ;;  %v188_v28 = vpop.f32.mrf.mxu1 }
 0x10f   :  { %v162_v29 = vadd.f32 %v262_v26, %v161_v27  ;;  %v189_v30 = vadd.f32 %v262_v26, %v188_v28 }
 0x111   :  { %v167_v31 = vmax.f32 %v162_v29, 0.0  ;;  %v194_v32 = vmax.f32 %v189_v30, 0.0 }
 0x113   :  { %169 = vst [vmem:[#allocation8] sm:$0xff] %v167_v31 }
 0x114   :  { %196 = vst [vmem:[#allocation8 + $0x8] sm:$0xff] %v194_v32 }
 0x11c   :  { %v164_v33 = vpop.f32.mrf.mxu2  ;;  %v191_v34 = vpop.f32.mrf.mxu3 }
 0x11d   :  { %v165_v35 = vadd.f32 %v262_v26, %v164_v33  ;;  %v192_v36 = vadd.f32 %v262_v26, %v191_v34 }
 0x11f   :  { %v168_v37 = vmax.f32 %v165_v35, 0.0  ;;  %v195_v38 = vmax.f32 %v192_v36, 0.0 }
 0x121   :  { %170 = vst [vmem:[#allocation8 + $0x10] sm:$0xff] %v168_v37 }
 0x122   :  { %197 = vst [vmem:[#allocation8 + $0x18] sm:$0xff] %v195_v38 }
 0x123   :  { %210 = dma.vmem_to_hbm [thread:$0]  %s203_s8, 512, %s205_s11, [#allocation4], %s366_s23, %s366_s23, %s367_s24  }
 0x124   :  { %363 = dma.done.wait [#allocation4], 512  }
 0x125   :  { %364 = vsyncadd [#allocation4], 4294966784 }
 0x126   :  { %215 = vsyncpa [#allocation3], 1 }
 0x127   :  { %216 = vsyncpa [#allocation6], 1 }
 0x128   :  { %217 = vsyncpa [#allocation4], 1 }

</bundles_post_ra>
